<compile_context>
chip_gen: v7x
topology: tpu7x:2x2x1
jax: 0.10.0
libtpu: 0.0.40
codegen_flags: <defaults>
</compile_context>

<pallas_src>
import functools

import jax
import jax.numpy as jnp
from jax.experimental import pallas as pl
from jax.experimental.pallas import tpu as pltpu

EPS = 1e-5        # PyTorch nn.LayerNorm default
NEG_INF = -1e30   # additive causal bias (scores are f32 when the bias is added)


def _layernorm(x, g, b):
    mu = jnp.mean(x, axis=-1, keepdims=True)
    var = jnp.mean((x - mu) ** 2, axis=-1, keepdims=True)
    return (x - mu) * jax.lax.rsqrt(var + EPS) * g + b


# --------------------------------------------------------------------------
# Kernel 1: LayerNorm-1 + fused QKV projection (once per token).
# --------------------------------------------------------------------------
def ln1_qkv_kernel(num_heads, scale,
                   x_ref, g_ref, b_ref, wqkv_ref, bqkv_ref,
                   q_ref, k_ref, v_ref):
    x = x_ref[0]                                   # (T, E) f32
    E = x.shape[1]
    hd = E // num_heads

    xn = _layernorm(x, g_ref[0], b_ref[0])
    qkv = jnp.dot(xn.astype(jnp.bfloat16), wqkv_ref[...],
                  preferred_element_type=jnp.float32) + bqkv_ref[0]

    # Fold 1/sqrt(head_dim) into Q once (removes H per-head score scalings).
    q = (qkv[:, :E] * scale).astype(jnp.bfloat16)
    k = qkv[:, E:2 * E].astype(jnp.bfloat16)
    v = qkv[:, 2 * E:].astype(jnp.bfloat16)

    # Head-major layout (H, T, hd) so the attention kernel reads per-head
    # slices without non-aligned lane slicing.
    for h in range(num_heads):
        sl = slice(h * hd, (h + 1) * hd)
        q_ref[0, h] = q[:, sl]
        k_ref[0, h] = k[:, sl]
        v_ref[0, h] = v[:, sl]


# --------------------------------------------------------------------------
# Kernel 2: causal flash attention (+Wo) + residual + LayerNorm-2 + FFN.
# --------------------------------------------------------------------------
def attn_ffn_kernel(num_heads, tq, exp_dtype,
                    x_ref, q_ref, k_ref, v_ref,
                    wo_ref, bo_ref, ln2_g_ref, ln2_b_ref,
                    w1_ref, b1_ref, w2_ref, b2_ref,
                    o_ref):
    x = x_ref[0]                                   # (tq, E) f32 (residual input)
    E = x.shape[1]
    hd = E // num_heads
    qi = pl.program_id(1)

    # Triangular bias for the diagonal KV tile only, built ONCE and shared by
    # all heads (local indices are valid because query/key tile offsets match).
    r = jax.lax.broadcasted_iota(jnp.int32, (tq, tq), 0)
    c = jax.lax.broadcasted_iota(jnp.int32, (tq, tq), 1)
    diag_bias = jnp.where(c <= r, 0.0, NEG_INF).astype(jnp.float32)

    head_outs = []
    for h in range(num_heads):
        q_h = q_ref[0, h]                          # (tq, hd) bf16, pre-scaled

        def kv_step(kvi, carry, bias):
            m, l, acc = carry
            start = pl.multiple_of(kvi * tq, tq)
            k_t = k_ref[0, h, pl.ds(start, tq), :]  # (tq, hd) bf16
            v_t = v_ref[0, h, pl.ds(start, tq), :]  # (tq, hd) bf16
            s = jax.lax.dot_general(q_h, k_t, (((1,), (1,)), ((), ())),
                                    preferred_element_type=jnp.float32)
            if bias is not None:
                s = s + bias
            m_new = jnp.maximum(m, jnp.max(s, axis=-1, keepdims=True))
            alpha = jnp.exp(m - m_new)
            p = jnp.exp((s - m_new).astype(exp_dtype))     # bf16 EUP on v6e/v7x
            l_new = alpha * l + jnp.sum(p, axis=-1, dtype=jnp.float32,
                                        keepdims=True)
            acc_new = alpha * acc + jnp.dot(p.astype(jnp.bfloat16), v_t,
                                            preferred_element_type=jnp.float32)
            return m_new, l_new, acc_new

        init = (jnp.full((tq, 1), NEG_INF, jnp.float32),
                jnp.zeros((tq, 1), jnp.float32),
                jnp.zeros((tq, hd), jnp.float32))
        # Fully-visible KV tiles [0, qi) need no mask; tiles past qi are fully
        # causally masked and are never touched (dynamic trip count = skip).
        carry = jax.lax.fori_loop(0, qi,
                                  lambda i, cr: kv_step(i, cr, None), init)
        m, l, acc = kv_step(qi, carry, diag_bias)   # diagonal tile (masked)
        head_outs.append((acc * pl.reciprocal(l, approx=True))
                         .astype(jnp.bfloat16))

    # One full-depth Wo matmul instead of H shallow per-head matmuls.
    attn = jnp.concatenate(head_outs, axis=-1)      # (tq, E) bf16
    attn = jnp.dot(attn, wo_ref[...],
                   preferred_element_type=jnp.float32) + bo_ref[0]

    x1 = x + attn                                   # residual (dropout = id)

    xn2 = _layernorm(x1, ln2_g_ref[0], ln2_b_ref[0])
    hdn = jnp.dot(xn2.astype(jnp.bfloat16), w1_ref[...],
                  preferred_element_type=jnp.float32) + b1_ref[0]
    hdn = jnp.maximum(hdn, 0.0)
    ff = jnp.dot(hdn.astype(jnp.bfloat16), w2_ref[...],
                 preferred_element_type=jnp.float32) + b2_ref[0]

    o_ref[0] = (x1 + ff).astype(o_ref.dtype)


# --------------------------------------------------------------------------
# Capability probes / planning.
# --------------------------------------------------------------------------
def _probe_copy_kernel(x_ref, o_ref):
    o_ref[...] = x_ref[...]


@functools.lru_cache(maxsize=None)
def _single_buffer_supported():
    """Narrow capability probe for pl.Buffered(1) (does not wrap the real
    kernels, so genuine kernel bugs are never masked)."""
    if not hasattr(pl, "Buffered"):
        return False
    try:
        out = pl.pallas_call(
            _probe_copy_kernel,
            out_shape=jax.ShapeDtypeStruct((16, 128), jnp.float32),
            grid=(2,),
            in_specs=[pl.BlockSpec((8, 128), lambda i: (0, 0),
                                   pipeline_mode=pl.Buffered(1))],
            out_specs=pl.BlockSpec((8, 128), lambda i: (i, 0)),
        )(jnp.zeros((8, 128), jnp.float32))
        jax.block_until_ready(out)
        return True
    except Exception:
        return False


def _device_plan(S):
    try:
        vmem_cap = int(pltpu.get_tpu_info().vmem_capacity_bytes)
    except Exception:
        vmem_cap = 128 << 20
    try:
        kind = jax.devices()[0].device_kind.lower()
    except Exception:
        kind = ""
    small_vmem = vmem_cap <= (64 << 20)
    # bf16 EUP exists on v6e / v7x; v5e and older keep exp in f32.
    bf16_exp = ("v6" in kind) or ("v7" in kind) or ("tpu7" in kind)
    prefer_tq = 128 if small_vmem else 256          # v7x: 64 MiB VMEM/TC
    if S <= prefer_tq:
        tq, s_pad = S, S                            # full-dim block (no padding)
    else:
        tq = prefer_tq
        s_pad = ((S + tq - 1) // tq) * tq           # pad; causal mask kills pads
    return dict(vmem_cap=vmem_cap, small_vmem=small_vmem,
                exp_dtype=jnp.bfloat16 if bf16_exp else jnp.float32,
                tq=tq, s_pad=s_pad, n_q=s_pad // tq)


def _clamp_vmem(need, cap):
    lo = 32 << 20
    hi = max(cap - (8 << 20), lo)                   # never exceed device VMEM
    return int(min(max(need + (16 << 20), lo), hi))


def _wspec_factory(single_buffer):
    if single_buffer:
        return lambda shape: pl.BlockSpec(shape, lambda b, i: (0, 0),
                                          pipeline_mode=pl.Buffered(1))
    return lambda shape: pl.BlockSpec(shape, lambda b, i: (0, 0))


# --------------------------------------------------------------------------
# pallas_call wrappers.
# --------------------------------------------------------------------------
def _ln1_qkv(x_p, p, num_heads, plan, buf1):
    B, S_pad, E = x_p.shape
    hd = E // num_heads
    T, n_t = plan["tq"], plan["n_q"]
    scale = 1.0 / float(hd) ** 0.5
    wspec = _wspec_factory(buf1)
    w_bufs = 1 if buf1 else 2

    need = (2 * T * E * 4                               # x blocks
            + 2 * 3 * T * E * 2                         # q/k/v output blocks
            + w_bufs * (3 * E * E * 2 + (3 * E + 2 * E) * 4))

    out_sds = jax.ShapeDtypeStruct((B, num_heads, S_pad, hd), jnp.bfloat16)
    qkv_out_spec = pl.BlockSpec((1, num_heads, T, hd),
                                lambda b, i: (b, 0, i, 0))
    kernel = functools.partial(ln1_qkv_kernel, num_heads, scale)

    return pl.pallas_call(
        kernel,
        out_shape=(out_sds, out_sds, out_sds),
        grid=(B, n_t),
        in_specs=[
            pl.BlockSpec((1, T, E), lambda b, i: (b, i, 0)),
            wspec((1, E)), wspec((1, E)),               # ln1 gamma / beta
            wspec((E, 3 * E)), wspec((1, 3 * E)),       # fused [Wq|Wk|Wv]^T, bias
        ],
        out_specs=(qkv_out_spec, qkv_out_spec, qkv_out_spec),
        compiler_params=pltpu.CompilerParams(
            dimension_semantics=("parallel", "parallel"),
            vmem_limit_bytes=_clamp_vmem(need, plan["vmem_cap"])),
    )(x_p, p["ln1_g"], p["ln1_b"], p["wqkv"], p["bqkv"])


def _attn_ffn(x_p, q, k, v, p, num_heads, plan, buf1):
    B, S_pad, E = x_p.shape
    FF = p["w1"].shape[1]
    hd = E // num_heads
    TQ, n_q = plan["tq"], plan["n_q"]
    wspec = _wspec_factory(buf1)
    w_bufs = 1 if buf1 else 2

    # Full-sequence K/V blocks only change with the batch index; on small-VMEM
    # parts (v7x) single-buffer them, otherwise keep double buffering so the
    # next batch's K/V prefetch overlaps compute.
    if buf1 and plan["small_vmem"]:
        kv_spec = pl.BlockSpec((1, num_heads, S_pad, hd),
                               lambda b, i: (b, 0, 0, 0),
                               pipeline_mode=pl.Buffered(1))
        kv_bufs = 1
    else:
        kv_spec = pl.BlockSpec((1, num_heads, S_pad, hd),
                               lambda b, i: (b, 0, 0, 0))
        kv_bufs = 2

    need = (2 * TQ * E * 4                              # x
            + 2 * TQ * E * 2                            # q
            + kv_bufs * 2 * S_pad * E * 2               # k + v
            + 2 * TQ * E * 4                            # out
            + w_bufs * 2 * (E * E + 2 * E * FF)         # wo, w1, w2 (bf16)
            + w_bufs * 4 * (3 * E + FF))                # biases + ln2 (f32)

    kernel = functools.partial(attn_ffn_kernel, num_heads, TQ,
                               plan["exp_dtype"])

    return pl.pallas_call(
        kernel,
        out_shape=jax.ShapeDtypeStruct((B, S_pad, E), x_p.dtype),
        grid=(B, n_q),
        in_specs=[
            pl.BlockSpec((1, TQ, E), lambda b, i: (b, i, 0)),            # x rows
            pl.BlockSpec((1, num_heads, TQ, hd), lambda b, i: (b, 0, i, 0)),  # q
            kv_spec, kv_spec,                                            # k, v
            wspec((E, E)), wspec((1, E)),                                # Wo, bo
            wspec((1, E)), wspec((1, E)),                                # ln2 g/b
            wspec((E, FF)), wspec((1, FF)),                              # W1, b1
            wspec((FF, E)), wspec((1, E)),                               # W2, b2
        ],
        out_specs=pl.BlockSpec((1, TQ, E), lambda b, i: (b, i, 0)),
        compiler_params=pltpu.CompilerParams(
            dimension_semantics=("parallel", "parallel"),
            vmem_limit_bytes=_clamp_vmem(need, plan["vmem_cap"])),
    )(x_p, q, k, v,
      p["wo"], p["bo"], p["ln2_g"], p["ln2_b"],
      p["w1"], p["b1"], p["w2"], p["b2"])


def transformer_block(x, kernel_params, num_heads):
    """x: (B, S, E) float32. kernel_params: dict from prepare_kernel_params."""
    B, S, E = x.shape
    assert E % num_heads == 0
    plan = _device_plan(S)
    buf1 = _single_buffer_supported()

    s_pad = plan["s_pad"]
    x_p = x if s_pad == S else jnp.pad(x, ((0, 0), (0, s_pad - S), (0, 0)))

    q, k, v = _ln1_qkv(x_p, kernel_params, num_heads, plan, buf1)
    out = _attn_ffn(x_p, q, k, v, kernel_params, num_heads, plan, buf1)
    return out if s_pad == S else out[:, :S, :]


# --------------------------------------------------------------------------
# Parameters / reference.
# --------------------------------------------------------------------------
def init_params(key, embed_dim, ff_dim):
    """Deterministic synthetic f32 parameters. Weights are PRE-TRANSPOSED to
    (in_features, out_features) so y = x @ W_t + b matches PyTorch Linear."""
    E, FF = embed_dim, ff_dim
    keys = jax.random.split(key, 8)
    std = 0.02

    def w(k, shape):
        return (std * jax.random.normal(k, shape)).astype(jnp.float32)

    return {
        "ln1_g": jnp.ones((1, E), jnp.float32),
        "ln1_b": jnp.zeros((1, E), jnp.float32),
        "wq_t": w(keys[0], (E, E)),
        "wk_t": w(keys[1], (E, E)),
        "wv_t": w(keys[2], (E, E)),
        "bq": jnp.zeros((1, E), jnp.float32),
        "bk": jnp.zeros((1, E), jnp.float32),
        "bv": jnp.zeros((1, E), jnp.float32),
        "wo_t": w(keys[3], (E, E)),
        "bo": jnp.zeros((1, E), jnp.float32),
        "ln2_g": jnp.ones((1, E), jnp.float32),
        "ln2_b": jnp.zeros((1, E), jnp.float32),
        "w1_t": w(keys[4], (E, FF)),
        "b1": (std * jax.random.normal(keys[5], (1, FF))).astype(jnp.float32),
        "w2_t": w(keys[6], (FF, E)),
        "b2": (std * jax.random.normal(keys[7], (1, E))).astype(jnp.float32),
    }


def prepare_kernel_params(p):
    """Repack params for the kernels (done once at load time): fuse Q/K/V into
    one wide (E, 3E) matmul and store matmul weights in bf16; biases and
    LayerNorm parameters stay f32 (accumulation in the kernels is f32)."""
    b16 = lambda a: a.astype(jnp.bfloat16)
    return {
        "ln1_g": p["ln1_g"], "ln1_b": p["ln1_b"],
        "wqkv": b16(jnp.concatenate([p["wq_t"], p["wk_t"], p["wv_t"]], axis=1)),
        "bqkv": jnp.concatenate([p["bq"], p["bk"], p["bv"]], axis=1),
        "wo": b16(p["wo_t"]), "bo": p["bo"],
        "ln2_g": p["ln2_g"], "ln2_b": p["ln2_b"],
        "w1": b16(p["w1_t"]), "b1": p["b1"],
        "w2": b16(p["w2_t"]), "b2": p["b2"],
    }


def transformer_block_ref(x, p, num_heads):
    """Pure-JAX f32 reference matching the PyTorch module (dropout = identity)."""
    B, S, E = x.shape
    hd = E // num_heads
    xn = _layernorm(x, p["ln1_g"][0], p["ln1_b"][0])
    q = xn @ p["wq_t"] + p["bq"][0]
    k = xn @ p["wk_t"] + p["bk"][0]
    v = xn @ p["wv_t"] + p["bv"][0]
    qh = q.reshape(B, S, num_heads, hd).transpose(0, 2, 1, 3)
    kh = k.reshape(B, S, num_heads, hd).transpose(0, 2, 1, 3)
    vh = v.reshape(B, S, num_heads, hd).transpose(0, 2, 1, 3)
    s = jnp.einsum("bhqd,bhkd->bhqk", qh, kh) / jnp.sqrt(jnp.float32(hd))
    mask = jnp.tril(jnp.ones((S, S), bool))
    s = jnp.where(mask, s, -jnp.inf)
    a = jax.nn.softmax(s, axis=-1)
    o = jnp.einsum("bhqk,bhkd->bhqd", a, vh).transpose(0, 2, 1, 3).reshape(B, S, E)
    x1 = x + (o @ p["wo_t"] + p["bo"][0])
    xn2 = _layernorm(x1, p["ln2_g"][0], p["ln2_b"][0])
    ff = jnp.maximum(xn2 @ p["w1_t"] + p["b1"][0], 0.0) @ p["w2_t"] + p["b2"][0]
    return x1 + ff


if __name__ == "__main__":
    # small shapes: batch=2, seq=8, embed=32, heads=4, ff=128
    B, S, E, H = 2, 8, 32, 4
    FF = E * 4

    key = jax.random.PRNGKey(0)
    kx, kp = jax.random.split(key)
    x = jax.random.normal(kx, (B, S, E), dtype=jnp.float32)
    params = init_params(kp, E, FF)
    kparams = prepare_kernel_params(params)

    out = transformer_block(x, kparams, num_heads=H)
    out = jax.block_until_ready(out)

    assert out.shape == (B, S, E), out.shape
    assert bool(jnp.all(jnp.isfinite(out)))

    # correctness vs. pure-JAX f32 reference (bf16 matmul operands => loose tol)
    ref = transformer_block_ref(x, params, H)
    max_err = float(jnp.max(jnp.abs(out - ref)))
    assert bool(jnp.allclose(out, ref, rtol=3e-2, atol=3e-2)), max_err

    print("KERNEL_OK")
</pallas_src>

<mosaic_0001>
module attributes {stable_mosaic.version = 11 : i64} {
  func.func @_probe_copy_kernel(%arg0: i32, %arg1: memref<8x128xf32, #tpu.memory_space<vmem>>, %arg2: memref<8x128xf32, #tpu.memory_space<vmem>>) attributes {dimension_semantics = [#tpu.dimension_semantics<arbitrary>], iteration_bounds = array<i64: 2>, scalar_prefetch = 0 : i64, scratch_operands = 0 : i64, tpu.core_type = #tpu.core_type<tc>, window_params = [{pipeline_mode = #tpu.pipeline_mode<synchronous>, transform_indices = @transform_0, window_bounds = array<i64: 8, 128>}, {transform_indices = @transform_1, window_bounds = array<i64: 8, 128>}]} {
    %c0 = arith.constant 0 : index
    %c0_0 = arith.constant 0 : index
    %0 = vector.load %arg1[%c0, %c0_0] : memref<8x128xf32, #tpu.memory_space<vmem>>, vector<8x128xf32>
    %c0_1 = arith.constant 0 : index
    %c0_2 = arith.constant 0 : index
    %1 = vector.load %arg2[%c0_1, %c0_2] : memref<8x128xf32, #tpu.memory_space<vmem>>, vector<8x128xf32>
    tpu.vector_store %arg2[%c0_1, %c0_2], %0 {strides = array<i32>} : memref<8x128xf32, #tpu.memory_space<vmem>>, vector<8x128xf32>,
    return
  }
  func.func @transform_0(%arg0: i32) -> (i32, i32) {
    %c0_i32 = arith.constant 0 : i32
    %c0_i32_0 = arith.constant 0 : i32
    %c0_i32_1 = arith.constant 0 : i32
    return %c0_i32, %c0_i32_0 : i32, i32
  }
  func.func @transform_1(%arg0: i32) -> (i32, i32) {
    %c0_i32 = arith.constant 0 : i32
    %c0_i32_0 = arith.constant 0 : i32
    return %arg0, %c0_i32 : i32, i32
  }
}

module attributes {stable_mosaic.version = 11 : i64} {
  func.func @ln1_qkv_kernel(%arg0: i32, %arg1: i32, %arg2: memref<1x8x32xf32, #tpu.memory_space<vmem>>, %arg3: memref<1x32xf32, #tpu.memory_space<vmem>>, %arg4: memref<1x32xf32, #tpu.memory_space<vmem>>, %arg5: memref<32x96xbf16, #tpu.memory_space<vmem>>, %arg6: memref<1x96xf32, #tpu.memory_space<vmem>>, %arg7: memref<1x4x8x8xbf16, #tpu.memory_space<vmem>>, %arg8: memref<1x4x8x8xbf16, #tpu.memory_space<vmem>>, %arg9: memref<1x4x8x8xbf16, #tpu.memory_space<vmem>>) attributes {dimension_semantics = [#tpu.dimension_semantics<parallel>, #tpu.dimension_semantics<parallel>], iteration_bounds = array<i64: 2, 1>, scalar_prefetch = 0 : i64, scratch_operands = 0 : i64, tpu.core_type = #tpu.core_type<tc>, window_params = [{transform_indices = @transform_0, window_bounds = array<i64: 1, 8, 32>}, {pipeline_mode = #tpu.pipeline_mode<synchronous>, transform_indices = @transform_1, window_bounds = array<i64: 1, 32>}, {pipeline_mode = #tpu.pipeline_mode<synchronous>, transform_indices = @transform_2, window_bounds = array<i64: 1, 32>}, {pipeline_mode = #tpu.pipeline_mode<synchronous>, transform_indices = @transform_3, window_bounds = array<i64: 32, 96>}, {pipeline_mode = #tpu.pipeline_mode<synchronous>, transform_indices = @transform_4, window_bounds = array<i64: 1, 96>}, {transform_indices = @transform_5, window_bounds = array<i64: 1, 4, 8, 8>}, {transform_indices = @transform_6, window_bounds = array<i64: 1, 4, 8, 8>}, {transform_indices = @transform_7, window_bounds = array<i64: 1, 4, 8, 8>}]} {
    %c0 = arith.constant 0 : index
    %c0_0 = arith.constant 0 : index
    %c0_1 = arith.constant 0 : index
    %0 = vector.load %arg2[%c0, %c0_0, %c0_1] : memref<1x8x32xf32, #tpu.memory_space<vmem>>, vector<1x8x32xf32>
    %1 = vector.shape_cast %0 : vector<1x8x32xf32> to vector<8x32xf32>
    %c0_2 = arith.constant 0 : index
    %c0_3 = arith.constant 0 : index
    %2 = vector.load %arg3[%c0_2, %c0_3] : memref<1x32xf32, #tpu.memory_space<vmem>>, vector<1x32xf32>
    %3 = vector.shape_cast %2 : vector<1x32xf32> to vector<32xf32>
    %c0_4 = arith.constant 0 : index
    %c0_5 = arith.constant 0 : index
    %4 = vector.load %arg4[%c0_4, %c0_5] : memref<1x32xf32, #tpu.memory_space<vmem>>, vector<1x32xf32>
    %5 = vector.shape_cast %4 : vector<1x32xf32> to vector<32xf32>
    %cst = arith.constant dense<0.000000e+00> : vector<8xf32>
    %6 = vector.multi_reduction <add>, %1, %cst [1] : vector<8x32xf32> to vector<8xf32>
    %7 = vector.shape_cast %6 : vector<8xf32> to vector<8x1xf32>
    %cst_6 = arith.constant 3.200000e+01 : f32
    %8 = vector.broadcast %cst_6 : f32 to vector<8x1xf32>
    %9 = arith.divf %7, %8 : vector<8x1xf32>
    %10 = vector.broadcast %9 : vector<8x1xf32> to vector<8x32xf32>
    %11 = arith.subf %1, %10 : vector<8x32xf32>
    %12 = arith.mulf %11, %11 : vector<8x32xf32>
    %cst_7 = arith.constant dense<0.000000e+00> : vector<8xf32>
    %13 = vector.multi_reduction <add>, %12, %cst_7 [1] : vector<8x32xf32> to vector<8xf32>
    %14 = vector.shape_cast %13 : vector<8xf32> to vector<8x1xf32>
    %cst_8 = arith.constant 3.200000e+01 : f32
    %15 = vector.broadcast %cst_8 : f32 to vector<8x1xf32>
    %16 = arith.divf %14, %15 : vector<8x1xf32>
    %17 = vector.broadcast %9 : vector<8x1xf32> to vector<8x32xf32>
    %18 = arith.subf %1, %17 : vector<8x32xf32>
    %cst_9 = arith.constant 9.99999974E-6 : f32
    %19 = vector.broadcast %cst_9 : f32 to vector<8x1xf32>
    %20 = arith.addf %16, %19 : vector<8x1xf32>
    %21 = math.rsqrt %20 : vector<8x1xf32>
    %22 = vector.broadcast %21 : vector<8x1xf32> to vector<8x32xf32>
    %23 = arith.mulf %18, %22 : vector<8x32xf32>
    %24 = vector.shape_cast %3 : vector<32xf32> to vector<1x32xf32>
    %25 = vector.broadcast %24 : vector<1x32xf32> to vector<8x32xf32>
    %26 = arith.mulf %23, %25 : vector<8x32xf32>
    %27 = vector.shape_cast %5 : vector<32xf32> to vector<1x32xf32>
    %28 = vector.broadcast %27 : vector<1x32xf32> to vector<8x32xf32>
    %29 = arith.addf %26, %28 : vector<8x32xf32>
    %30 = arith.truncf %29 : vector<8x32xf32> to vector<8x32xbf16>
    %c0_10 = arith.constant 0 : index
    %c0_11 = arith.constant 0 : index
    %31 = vector.load %arg5[%c0_10, %c0_11] : memref<32x96xbf16, #tpu.memory_space<vmem>>, vector<32x96xbf16>
    %cst_12 = arith.constant dense<0.000000e+00> : vector<8x96xf32>
    %32 = tpu.matmul %30, %31, %cst_12 {dimension_numbers = #tpu.dot_dimension_numbers<[1], [0], [0], [1], [0, 0, 1, 1], [], []>} : vector<8x32xbf16>, vector<32x96xbf16>, vector<8x96xf32> -> vector<8x96xf32>
    %c0_13 = arith.constant 0 : index
    %c0_14 = arith.constant 0 : index
    %33 = vector.load %arg6[%c0_13, %c0_14] : memref<1x96xf32, #tpu.memory_space<vmem>>, vector<1x96xf32>
    %34 = vector.shape_cast %33 : vector<1x96xf32> to vector<96xf32>
    %35 = vector.shape_cast %34 : vector<96xf32> to vector<1x96xf32>
    %36 = vector.broadcast %35 : vector<1x96xf32> to vector<8x96xf32>
    %37 = arith.addf %32, %36 : vector<8x96xf32>
    %38 = vector.extract_strided_slice %37 {offsets = [0, 0], sizes = [8, 32], strides = [1, 1]} : vector<8x96xf32> to vector<8x32xf32>
    %cst_15 = arith.constant 0.353553385 : f32
    %39 = vector.broadcast %cst_15 : f32 to vector<8x32xf32>
    %40 = arith.mulf %38, %39 : vector<8x32xf32>
    %41 = arith.truncf %40 : vector<8x32xf32> to vector<8x32xbf16>
    %42 = vector.extract_strided_slice %37 {offsets = [0, 32], sizes = [8, 32], strides = [1, 1]} : vector<8x96xf32> to vector<8x32xf32>
    %43 = arith.truncf %42 : vector<8x32xf32> to vector<8x32xbf16>
    %44 = vector.extract_strided_slice %37 {offsets = [0, 64], sizes = [8, 32], strides = [1, 1]} : vector<8x96xf32> to vector<8x32xf32>
    %45 = arith.truncf %44 : vector<8x32xf32> to vector<8x32xbf16>
    %46 = vector.extract_strided_slice %41 {offsets = [0, 0], sizes = [8, 8], strides = [1, 1]} : vector<8x32xbf16> to vector<8x8xbf16>
    %c0_16 = arith.constant 0 : index
    %c0_17 = arith.constant 0 : index
    %c0_18 = arith.constant 0 : index
    %c0_19 = arith.constant 0 : index
    %47 = vector.load %arg7[%c0_16, %c0_17, %c0_18, %c0_19] : memref<1x4x8x8xbf16, #tpu.memory_space<vmem>>, vector<1x1x8x8xbf16>
    %48 = vector.shape_cast %47 : vector<1x1x8x8xbf16> to vector<8x8xbf16>
    %49 = vector.shape_cast %46 : vector<8x8xbf16> to vector<1x1x8x8xbf16>
    tpu.vector_store %arg7[%c0_16, %c0_17, %c0_18, %c0_19], %49 {strides = array<i32>} : memref<1x4x8x8xbf16, #tpu.memory_space<vmem>>, vector<1x1x8x8xbf16>,
    %50 = vector.extract_strided_slice %43 {offsets = [0, 0], sizes = [8, 8], strides = [1, 1]} : vector<8x32xbf16> to vector<8x8xbf16>
    %c0_20 = arith.constant 0 : index
    %c0_21 = arith.constant 0 : index
    %c0_22 = arith.constant 0 : index
    %c0_23 = arith.constant 0 : index
    %51 = vector.load %arg8[%c0_20, %c0_21, %c0_22, %c0_23] : memref<1x4x8x8xbf16, #tpu.memory_space<vmem>>, vector<1x1x8x8xbf16>
    %52 = vector.shape_cast %51 : vector<1x1x8x8xbf16> to vector<8x8xbf16>
    %53 = vector.shape_cast %50 : vector<8x8xbf16> to vector<1x1x8x8xbf16>
    tpu.vector_store %arg8[%c0_20, %c0_21, %c0_22, %c0_23], %53 {strides = array<i32>} : memref<1x4x8x8xbf16, #tpu.memory_space<vmem>>, vector<1x1x8x8xbf16>,
    %54 = vector.extract_strided_slice %45 {offsets = [0, 0], sizes = [8, 8], strides = [1, 1]} : vector<8x32xbf16> to vector<8x8xbf16>
    %c0_24 = arith.constant 0 : index
    %c0_25 = arith.constant 0 : index
    %c0_26 = arith.constant 0 : index
    %c0_27 = arith.constant 0 : index
    %55 = vector.load %arg9[%c0_24, %c0_25, %c0_26, %c0_27] : memref<1x4x8x8xbf16, #tpu.memory_space<vmem>>, vector<1x1x8x8xbf16>
    %56 = vector.shape_cast %55 : vector<1x1x8x8xbf16> to vector<8x8xbf16>
    %57 = vector.shape_cast %54 : vector<8x8xbf16> to vector<1x1x8x8xbf16>
    tpu.vector_store %arg9[%c0_24, %c0_25, %c0_26, %c0_27], %57 {strides = array<i32>} : memref<1x4x8x8xbf16, #tpu.memory_space<vmem>>, vector<1x1x8x8xbf16>,
    %58 = vector.extract_strided_slice %41 {offsets = [0, 8], sizes = [8, 8], strides = [1, 1]} : vector<8x32xbf16> to vector<8x8xbf16>
    %c0_28 = arith.constant 0 : index
    %c1 = arith.constant 1 : index
    %c0_29 = arith.constant 0 : index
    %c0_30 = arith.constant 0 : index
    %59 = vector.load %arg7[%c0_28, %c1, %c0_29, %c0_30] : memref<1x4x8x8xbf16, #tpu.memory_space<vmem>>, vector<1x1x8x8xbf16>
    %60 = vector.shape_cast %59 : vector<1x1x8x8xbf16> to vector<8x8xbf16>
    %61 = vector.shape_cast %58 : vector<8x8xbf16> to vector<1x1x8x8xbf16>
    tpu.vector_store %arg7[%c0_28, %c1, %c0_29, %c0_30], %61 {strides = array<i32>} : memref<1x4x8x8xbf16, #tpu.memory_space<vmem>>, vector<1x1x8x8xbf16>,
    %62 = vector.extract_strided_slice %43 {offsets = [0, 8], sizes = [8, 8], strides = [1, 1]} : vector<8x32xbf16> to vector<8x8xbf16>
    %c0_31 = arith.constant 0 : index
    %c1_32 = arith.constant 1 : index
    %c0_33 = arith.constant 0 : index
    %c0_34 = arith.constant 0 : index
    %63 = vector.load %arg8[%c0_31, %c1_32, %c0_33, %c0_34] : memref<1x4x8x8xbf16, #tpu.memory_space<vmem>>, vector<1x1x8x8xbf16>
    %64 = vector.shape_cast %63 : vector<1x1x8x8xbf16> to vector<8x8xbf16>
    %65 = vector.shape_cast %62 : vector<8x8xbf16> to vector<1x1x8x8xbf16>
    tpu.vector_store %arg8[%c0_31, %c1_32, %c0_33, %c0_34], %65 {strides = array<i32>} : memref<1x4x8x8xbf16, #tpu.memory_space<vmem>>, vector<1x1x8x8xbf16>,
    %66 = vector.extract_strided_slice %45 {offsets = [0, 8], sizes = [8, 8], strides = [1, 1]} : vector<8x32xbf16> to vector<8x8xbf16>
    %c0_35 = arith.constant 0 : index
    %c1_36 = arith.constant 1 : index
    %c0_37 = arith.constant 0 : index
    %c0_38 = arith.constant 0 : index
    %67 = vector.load %arg9[%c0_35, %c1_36, %c0_37, %c0_38] : memref<1x4x8x8xbf16, #tpu.memory_space<vmem>>, vector<1x1x8x8xbf16>
    %68 = vector.shape_cast %67 : vector<1x1x8x8xbf16> to vector<8x8xbf16>
    %69 = vector.shape_cast %66 : vector<8x8xbf16> to vector<1x1x8x8xbf16>
    tpu.vector_store %arg9[%c0_35, %c1_36, %c0_37, %c0_38], %69 {strides = array<i32>} : memref<1x4x8x8xbf16, #tpu.memory_space<vmem>>, vector<1x1x8x8xbf16>,
    %70 = vector.extract_strided_slice %41 {offsets = [0, 16], sizes = [8, 8], strides = [1, 1]} : vector<8x32xbf16> to vector<8x8xbf16>
    %c0_39 = arith.constant 0 : index
    %c2 = arith.constant 2 : index
    %c0_40 = arith.constant 0 : index
    %c0_41 = arith.constant 0 : index
    %71 = vector.load %arg7[%c0_39, %c2, %c0_40, %c0_41] : memref<1x4x8x8xbf16, #tpu.memory_space<vmem>>, vector<1x1x8x8xbf16>
    %72 = vector.shape_cast %71 : vector<1x1x8x8xbf16> to vector<8x8xbf16>
    %73 = vector.shape_cast %70 : vector<8x8xbf16> to vector<1x1x8x8xbf16>
    tpu.vector_store %arg7[%c0_39, %c2, %c0_40, %c0_41], %73 {strides = array<i32>} : memref<1x4x8x8xbf16, #tpu.memory_space<vmem>>, vector<1x1x8x8xbf16>,
    %74 = vector.extract_strided_slice %43 {offsets = [0, 16], sizes = [8, 8], strides = [1, 1]} : vector<8x32xbf16> to vector<8x8xbf16>
    %c0_42 = arith.constant 0 : index
    %c2_43 = arith.constant 2 : index
    %c0_44 = arith.constant 0 : index
    %c0_45 = arith.constant 0 : index
    %75 = vector.load %arg8[%c0_42, %c2_43, %c0_44, %c0_45] : memref<1x4x8x8xbf16, #tpu.memory_space<vmem>>, vector<1x1x8x8xbf16>
    %76 = vector.shape_cast %75 : vector<1x1x8x8xbf16> to vector<8x8xbf16>
    %77 = vector.shape_cast %74 : vector<8x8xbf16> to vector<1x1x8x8xbf16>
    tpu.vector_store %arg8[%c0_42, %c2_43, %c0_44, %c0_45], %77 {strides = array<i32>} : memref<1x4x8x8xbf16, #tpu.memory_space<vmem>>, vector<1x1x8x8xbf16>,
    %78 = vector.extract_strided_slice %45 {offsets = [0, 16], sizes = [8, 8], strides = [1, 1]} : vector<8x32xbf16> to vector<8x8xbf16>
    %c0_46 = arith.constant 0 : index
    %c2_47 = arith.constant 2 : index
    %c0_48 = arith.constant 0 : index
    %c0_49 = arith.constant 0 : index
    %79 = vector.load %arg9[%c0_46, %c2_47, %c0_48, %c0_49] : memref<1x4x8x8xbf16, #tpu.memory_space<vmem>>, vector<1x1x8x8xbf16>
    %80 = vector.shape_cast %79 : vector<1x1x8x8xbf16> to vector<8x8xbf16>
    %81 = vector.shape_cast %78 : vector<8x8xbf16> to vector<1x1x8x8xbf16>
    tpu.vector_store %arg9[%c0_46, %c2_47, %c0_48, %c0_49], %81 {strides = array<i32>} : memref<1x4x8x8xbf16, #tpu.memory_space<vmem>>, vector<1x1x8x8xbf16>,
    %82 = vector.extract_strided_slice %41 {offsets = [0, 24], sizes = [8, 8], strides = [1, 1]} : vector<8x32xbf16> to vector<8x8xbf16>
    %c0_50 = arith.constant 0 : index
    %c3 = arith.constant 3 : index
    %c0_51 = arith.constant 0 : index
    %c0_52 = arith.constant 0 : index
    %83 = vector.load %arg7[%c0_50, %c3, %c0_51, %c0_52] : memref<1x4x8x8xbf16, #tpu.memory_space<vmem>>, vector<1x1x8x8xbf16>
    %84 = vector.shape_cast %83 : vector<1x1x8x8xbf16> to vector<8x8xbf16>
    %85 = vector.shape_cast %82 : vector<8x8xbf16> to vector<1x1x8x8xbf16>
    tpu.vector_store %arg7[%c0_50, %c3, %c0_51, %c0_52], %85 {strides = array<i32>} : memref<1x4x8x8xbf16, #tpu.memory_space<vmem>>, vector<1x1x8x8xbf16>,
    %86 = vector.extract_strided_slice %43 {offsets = [0, 24], sizes = [8, 8], strides = [1, 1]} : vector<8x32xbf16> to vector<8x8xbf16>
    %c0_53 = arith.constant 0 : index
    %c3_54 = arith.constant 3 : index
    %c0_55 = arith.constant 0 : index
    %c0_56 = arith.constant 0 : index
    %87 = vector.load %arg8[%c0_53, %c3_54, %c0_55, %c0_56] : memref<1x4x8x8xbf16, #tpu.memory_space<vmem>>, vector<1x1x8x8xbf16>
    %88 = vector.shape_cast %87 : vector<1x1x8x8xbf16> to vector<8x8xbf16>
    %89 = vector.shape_cast %86 : vector<8x8xbf16> to vector<1x1x8x8xbf16>
    tpu.vector_store %arg8[%c0_53, %c3_54, %c0_55, %c0_56], %89 {strides = array<i32>} : memref<1x4x8x8xbf16, #tpu.memory_space<vmem>>, vector<1x1x8x8xbf16>,
    %90 = vector.extract_strided_slice %45 {offsets = [0, 24], sizes = [8, 8], strides = [1, 1]} : vector<8x32xbf16> to vector<8x8xbf16>
    %c0_57 = arith.constant 0 : index
    %c3_58 = arith.constant 3 : index
    %c0_59 = arith.constant 0 : index
    %c0_60 = arith.constant 0 : index
    %91 = vector.load %arg9[%c0_57, %c3_58, %c0_59, %c0_60] : memref<1x4x8x8xbf16, #tpu.memory_space<vmem>>, vector<1x1x8x8xbf16>
    %92 = vector.shape_cast %91 : vector<1x1x8x8xbf16> to vector<8x8xbf16>
    %93 = vector.shape_cast %90 : vector<8x8xbf16> to vector<1x1x8x8xbf16>
    tpu.vector_store %arg9[%c0_57, %c3_58, %c0_59, %c0_60], %93 {strides = array<i32>} : memref<1x4x8x8xbf16, #tpu.memory_space<vmem>>, vector<1x1x8x8xbf16>,
    return
  }
  func.func @transform_0(%arg0: i32, %arg1: i32) -> (i32, i32, i32) {
    %c0_i32 = arith.constant 0 : i32
    %c0_i32_0 = arith.constant 0 : i32
    return %arg0, %arg1, %c0_i32 : i32, i32, i32
  }
  func.func @transform_1(%arg0: i32, %arg1: i32) -> (i32, i32) {
    %c0_i32 = arith.constant 0 : i32
    %c0_i32_0 = arith.constant 0 : i32
    %c0_i32_1 = arith.constant 0 : i32
    return %c0_i32, %c0_i32_0 : i32, i32
  }
  func.func @transform_2(%arg0: i32, %arg1: i32) -> (i32, i32) {
    %c0_i32 = arith.constant 0 : i32
    %c0_i32_0 = arith.constant 0 : i32
    %c0_i32_1 = arith.constant 0 : i32
    return %c0_i32, %c0_i32_0 : i32, i32
  }
  func.func @transform_3(%arg0: i32, %arg1: i32) -> (i32, i32) {
    %c0_i32 = arith.constant 0 : i32
    %c0_i32_0 = arith.constant 0 : i32
    %c0_i32_1 = arith.constant 0 : i32
    return %c0_i32, %c0_i32_0 : i32, i32
  }
  func.func @transform_4(%arg0: i32, %arg1: i32) -> (i32, i32) {
    %c0_i32 = arith.constant 0 : i32
    %c0_i32_0 = arith.constant 0 : i32
    %c0_i32_1 = arith.constant 0 : i32
    return %c0_i32, %c0_i32_0 : i32, i32
  }
  func.func @transform_5(%arg0: i32, %arg1: i32) -> (i32, i32, i32, i32) {
    %c0_i32 = arith.constant 0 : i32
    %c0_i32_0 = arith.constant 0 : i32
    %c0_i32_1 = arith.constant 0 : i32
    return %arg0, %c0_i32, %arg1, %c0_i32_0 : i32, i32, i32, i32
  }
  func.func @transform_6(%arg0: i32, %arg1: i32) -> (i32, i32, i32, i32) {
    %c0_i32 = arith.constant 0 : i32
    %c0_i32_0 = arith.constant 0 : i32
    %c0_i32_1 = arith.constant 0 : i32
    return %arg0, %c0_i32, %arg1, %c0_i32_0 : i32, i32, i32, i32
  }
  func.func @transform_7(%arg0: i32, %arg1: i32) -> (i32, i32, i32, i32) {
    %c0_i32 = arith.constant 0 : i32
    %c0_i32_0 = arith.constant 0 : i32
    %c0_i32_1 = arith.constant 0 : i32
    return %arg0, %c0_i32, %arg1, %c0_i32_0 : i32, i32, i32, i32
  }
}

</mosaic_0001>

<bundles_post_ra>
// kernel: tpu_custom_call.1
= control target key start
LH: loop header
LB: loop body
LE: loop exit
PB: predicated region body
PF: predicated region fallthrough
CT: control target
= control target key end

     0   :  { %6 = vsyncpa [#allocation3], 0  ;;  %s481_s0 = inlined_call_operand.hbm [shape: f32[8,128], index: 0, kind: input, shape index: {}]   ;;  %s482_s1 = inlined_call_operand.hbm [shape: f32[16,128], index: 1, kind: output, shape index: {}]  }
   0x1   :  { %7 = vsyncpa [#allocation4], 0 }
   0x2   :  { %9 = vsyncpa [#allocation4 + $0x1], 0  ;;  %s351_s6 = smov 0   ;;  %s353_s7 = smov 0  }
   0x3   :  { %s355_s8 = smov 0   ;;  %s357_s9 = smov 0  }
   0x4 LB: > { %s372_s10 = sadd.s32 4294967295, %s337_s9   ;;  %s183_s11 = sadd.s32 4294967294, %s337_s9   ;;  %s337_s9 = sphi %s357_s9, %s498_s9   ;;  %s333_s8 = sphi %s355_s8, %s497_s8   ;;  %s329_s7 = sphi %s353_s7, %s496_s7   ;;  %s325_s6 = sphi %s351_s6, %s495_s6  }
   0x5   : > { %s376_s12 = sadd.s32 1, %s337_s9   ;;  %s43_s13 = sadd.s32 1, %s333_s8 }
   0x6   : > { %s40_s14 = ssub.s32 %s337_s9, %s376_s12  ;;  %p53_p0 = scmp.ne.s32.totalorder %s333_s8, %s329_s7 }
   0x7   : > { %p41_p1 = scmp.eq.s32.totalorder %s40_s14, 0  ;;  %p54_p2 = scmp.eq.s32.totalorder %s372_s10, 1 }
   0x8   : > { %p59_p3 = scmp.ne.s32.totalorder %s329_s7, %s325_s6  ;;  %p60_p4 = scmp.eq.s32.totalorder %s183_s11, 1 }
   0x9   : > { %s387_s15 = scalar_select %p41_p1, %s333_s8, %s43_s13  }
   0xa   : > { %p389_p5 = por %p54_p2, %p53_p0  ;;  %p393_p6 = por %p60_p4, %p59_p3 }
   0xb   : > { %p184_p7 = scmp.ge.s32.totalorder %s337_s9, 1  ;;  %p67_p8 = scmp.lt.s32.totalorder %s337_s9, 3 }
   0xc   : > { %s486_s16 = scalar_select %p389_p5, 1, 0 }
   0xd   : > { %s487_s17 = scalar_select %p393_p6, 1, 0 }
   0xe   : > { %p483_p9 = scmp.eq.s32.totalorder %s372_s10, 0  ;;  %p400_p10 = pnand %p184_p7, %p67_p8 }
   0xf   : > { %s339_s19 = smov [#allocation2]   ;;  %s243_s24 = scalar_lea.hbm %s481_s0, 128 }
  0x10   : > { %s488_s18 = scalar_select %p400_p10, 1, 0 }
  0x11   : > { %s80_s20 = sshll.u32 %s339_s19, 4  ;;  %p199_p11 = pneg %p400_p10  ;;  %s81_s20 = int_to_ptr.vmem [resolvable:$true] %s80_s20 }
  0x12   : > { %p244_p13 = scmp.ne.s32.totalorder %s481_s0, %s243_s24  ;;  %p250_p3 = scmp.lt.u32.totalorder %s243_s24, %s481_s0 }
  0x13   : > { %p408_p12 = pnand %p483_p9, %p199_p11 }
  0x15   : > { %p245_p0 = pneg %p408_p12 }
  0x17   : > { %p246_p1 = pnand %p245_p0, %p244_p13 }
  0x19   : > { %p247_p2 = pneg %p246_p1 }
  0x1b   : > { %p252_p4 = pnand %p250_p3, %p247_p2 }
  0x1d   : > { %255 = shalt.err (!%p252_p4)
}
  0x1e   : > { %s256_s29 = scalar_lea.vmem %s81_s20, 128  ;;  %p264_p9 = scmp.lt.s32.totalorder %s81_s20, %s81_s20 }
  0x1f   : > { %p257_p7 = scmp.ne.s32.totalorder %s81_s20, %s256_s29  ;;  %p265_p6 = scmp.lt.s32.totalorder %s256_s29, %s256_s29 }
  0x21   : > { %p259_p8 = pnand %p257_p7, %p245_p0  ;;  %p266_p5 = por %p265_p6, %p264_p9 }
  0x23   : > { %p260_p11 = pneg %p259_p8 }
  0x25   : > { %p267_p10 = pnand %p266_p5, %p260_p11 }
  0x27   : > { %270 = shalt.err (!%p267_p10)
}
  0x28   : > { %202 = dma.hbm_to_vmem [thread:$0]  (!%p408_p12), %s481_s0, 128, %s81_s20, [#allocation3]  }
  0x29   : > { %p490_p13 = scmp.ne.s32.totalorder %s488_s18, 0 }
  0x2a   : > { %p491_p1 = scmp.eq.s32.totalorder (!%p490_p13), %s372_s10, 0 }
  0x2b   : > { %93 = sbr.rel (%p490_p13) target bundleno = 77 (0x4d), region = 24 }
  0x32   : > { %316 = dma.done.wait (%p491_p1), [#allocation3], 128   ;;  %p492_p0 = pmov %p491_p1 }
  0x33   : > { %s105_s3 = sand.u32 1, %s329_s7   ;;  %s190_s13 = sshll.u32 %s372_s10, 7  ;;  %v108_v0 = vld [vmem:[#allocation2] sm:$0xff] }
  0x34   : > { %318 = vsyncadd (%p492_p0), [#allocation3], 4294967168  ;;  %s188_s4 = sshll.u32 %s105_s3, 3  ;;  %s441_s18 = scalar_lea.hbm %s482_s1, %s190_s13 }
  0x35   : > { %s107_s5 = scalar_lea.vmem [#allocation5], %s188_s4  ;;  %s111_s20 = scalar_lea.sflag [#allocation4], %s105_s3 }
  0x36   : > { %s124_s11 = sshll.u32 %s107_s5, 4  ;;  %109 = vst [vmem:[%s107_s5] sm:$0xff] %v108_v0  ;;  %p493_p6 = scmp.ne.s32.totalorder %s486_s16, 0  ;;  %s436_s11 = int_to_ptr.vmem [resolvable:$true] %s124_s11 }
  0x37   : > { %s271_s21 = scalar_lea.vmem %s436_s11, 128  ;;  %s340_s22 = smov [#allocation5]  }
  0x38   : > { %p272_p5 = scmp.ne.s32.totalorder %s436_s11, %s271_s21  ;;  %s275_s10 = sshll.u32 %s340_s22, 4  ;;  %s276_s10 = int_to_ptr.vmem [resolvable:$false] %s275_s10 }
  0x39   : > { %s277_s23 = scalar_lea.vmem %s276_s10, 256  ;;  %p278_p12 = scmp.lt.s32.totalorder %s436_s11, %s276_s10 }
  0x3a   : > { %p273_p9 = pnand %p272_p5, %p493_p6  ;;  %p279_p2 = scmp.lt.s32.totalorder %s277_s23, %s271_s21 }
  0x3c   : > { %p274_p10 = pneg %p273_p9  ;;  %p280_p3 = por %p279_p2, %p278_p12 }
  0x3e   : > { %p281_p4 = pnand %p280_p3, %p274_p10 }
  0x40   : > { %284 = shalt.err (!%p281_p4)
}
  0x41   : > { %s285_s24 = scalar_lea.hbm %s441_s18, 128  ;;  %s289_s27 = scalar_lea.hbm %s482_s1, 256 }
  0x42   : > { %p286_p7 = scmp.ne.s32.totalorder %s441_s18, %s285_s24  ;;  %p290_p13 = scmp.lt.u32.totalorder %s441_s18, %s482_s1 }
  0x43   : > { %p291_p1 = scmp.lt.u32.totalorder %s289_s27, %s285_s24  ;;  %p293_p5 = scmp.lt.u32.totalorder %s285_s24, %s441_s18 }
  0x44   : > { %p287_p8 = pnand %p286_p7, %p493_p6 }
  0x45   : > { %p292_p0 = por %p291_p1, %p290_p13 }
  0x46   : > { %p288_p11 = pneg %p287_p8 }
  0x47   : > { %p294_p9 = por %p293_p5, %p292_p0 }
  0x49   : > { %p295_p10 = pnand %p294_p9, %p288_p11 }
  0x4b   : > { %298 = shalt.err (!%p295_p10)
}
  0x4c   : > { %197 = dma.vmem_to_hbm [thread:$0]  (%p493_p6), %s436_s11, 128, %s441_s18, %s111_s20  }
  0x4d PF: > { %p209_p12 = scmp.ge.s32.totalorder %s337_s9, 2  ;;  %s136_s30 = sand.u32 1, %s325_s6  }
  0x4e   : > { %p494_p2 = scmp.ne.s32.totalorder %s487_s17, 0  ;;  %s137_s2 = scalar_lea.sflag [#allocation4], %s136_s30 }
  0x50   : > { %p204_p3 = pnand %p209_p12, %p494_p2 }
  0x52   : > { %320 = dma.done.wait (!%p204_p3), %s137_s2, 128  }
  0x53   : > { %322 = vsyncadd (!%p204_p3), %s137_s2, 4294967168  ;;  %p12_p4 = scmp.ge.s32.totalorder %s376_s12, 4   ;;  %s495_s6 = smov %s329_s7 }
  0x54   : > { %s496_s7 = smov %s333_s8  ;;  %s497_s8 = smov %s387_s15 }
  0x55   : > { %s498_s9 = smov %s376_s12  ;;  %14 = sbr.rel (!%p12_p4) target bundleno = 4 (0x4), region = 61 }
  0x5c   :  { %142 = vsyncpa [#allocation3], 1 }
  0x5d   :  { %144 = vsyncpa [#allocation3 + $0x1], 1 }
  0x5e   :  { %145 = vsyncpa [#allocation4], 1 }
  0x5f   :  { %147 = vsyncpa [#allocation4 + $0x1], 1 }

// kernel: tpu_custom_call.1
= control target key start
LH: loop header
LB: loop body
LE: loop exit
PB: predicated region body
PF: predicated region fallthrough
CT: control target
= control target key end

     0   :  { %s1495_s0 = inlined_call_operand.hbm [shape: f32[2,8,32], index: 0, kind: input, shape index: {}]   ;;  %s1496_s1 = inlined_call_operand.vmem [shape: f32[1,32], index: 1, kind: input, shape index: {}]   ;;  %s1497_s2 = inlined_call_operand.vmem [shape: f32[1,32], index: 2, kind: input, shape index: {}]   ;;  %s1498_s3 = inlined_call_operand.hbm [shape: bf16[32,96], index: 3, kind: input, shape index: {}]   ;;  %s1499_s4 = inlined_call_operand.vmem [shape: f32[1,96], index: 4, kind: input, shape index: {}]   ;;  %s1500_s5 = inlined_call_operand.hbm [shape: bf16[2,4,8,8], index: 5, kind: output, shape index: {0}]   ;;  %s1501_s6 = inlined_call_operand.hbm [shape: bf16[2,4,8,8], index: 6, kind: output, shape index: {1}]   ;;  %s1502_s7 = inlined_call_operand.hbm [shape: bf16[2,4,8,8], index: 7, kind: output, shape index: {2}]  }
   0x1   :  { %1510 = sst [smem:[#allocation16_spill]] %s1498_s3 }
   0x2   :  { %13 = vsyncpa [#allocation3], 0 }
   0x3   :  { %15 = vsyncpa [#allocation3 + $0x1], 0 }
   0x4   :  { %16 = vsyncpa [#allocation6], 0 }
   0x5   :  { %17 = vsyncpa [#allocation4], 0 }
   0x6   :  { %19 = vsyncpa [#allocation4 + $0x1], 0 }
   0x7   :  { %20 = vsyncpa [#allocation9], 0 }
   0x8   :  { %22 = vsyncpa [#allocation9 + $0x1], 0  ;;  %s1157_s24 = smov 0   ;;  %s1159_s25 = smov 0  }
   0x9   :  { %s1161_s26 = smov 0   ;;  %s1163_s27 = smov 0  }
   0xa   :  { %s1165_s28 = smov 0   ;;  %s1167_s29 = smov 0  }
   0xb LB: > { %s1188_s30 = sadd.s32 4294967295, %s1094_s29   ;;  %s1506_s8 = sadd.s32 4294967294, %s1094_s29   ;;  %s1094_s29 = sphi %s1167_s29, %s28_s29   ;;  %s1090_s28 = sphi %s1165_s28, %s1535_s28   ;;  %s1086_s27 = sphi %s1163_s27, %s1534_s27   ;;  %s1082_s26 = sphi %s1161_s26, %s1533_s26   ;;  %s1078_s25 = sphi %s1159_s25, %s1532_s25   ;;  %s1074_s24 = sphi %s1157_s24, %s1531_s24  }
   0xc   : > { %p62_p0 = scmp.ne.s32.totalorder %s1078_s25, %s1074_s24  ;;  %p1503_p1 = scmp.eq.s32.totalorder %s1188_s30, 0 }
   0xd   : > { %p178_p3 = scmp.eq.s32.totalorder %s1506_s8, 1  ;;  %p732_p5 = scmp.ge.s32.totalorder %s1094_s29, 1 }
   0xe   : > { %p1199_p4 = por %p1503_p1, %p62_p0  ;;  %p241_p7 = scmp.lt.s32.totalorder %s1094_s29, 3 }
   0xf   : > { %p1204_p6 = por %p178_p3, %p62_p0  ;;  %s1096_s12 = smov [#allocation5]  }
  0x10   : > { %s1511_s9 = scalar_select %p1199_p4, 1, 0 }
  0x11   : > { %s1512_s10 = scalar_select %p1204_p6, 1, 0 }
  0x12   : > { %p1209_p8 = pnand %p732_p5, %p241_p7  ;;  %s259_s13 = sshll.u32 %s1096_s12, 4  ;;  %s260_s13 = int_to_ptr.vmem [resolvable:$true] %s259_s13 }
  0x13   : > { %s40_s15 = sadd.s32 1, %s1090_s28  ;;  %s1515_s3 = sld [smem:[#allocation16_spill]] }
  0x14   : > { %s1513_s11 = scalar_select %p1209_p8, 1, 0 }
  0x15   : > { %p799_p9 = pneg %p1209_p8 }
  0x17   : > { %p1218_p11 = pnand %p799_p9, %p1503_p1 }
  0x19   : > { %s890_s18 = scalar_lea.hbm %s1515_s3, 256  ;;  %p892_p13 = pneg %p1218_p11 }
  0x1a   : > { %p891_p12 = scmp.ne.s32.totalorder %s1515_s3, %s890_s18  ;;  %p897_p5 = scmp.lt.u32.totalorder %s890_s18, %s1515_s3 }
  0x1c   : > { %p893_p0 = pnand %p892_p13, %p891_p12 }
  0x1e   : > { %p894_p3 = pneg %p893_p0 }
  0x20   : > { %p899_p7 = pnand %p897_p5, %p894_p3 }
  0x22   : > { %902 = shalt.err (!%p899_p7)
}
  0x23   : > { %s903_s23 = scalar_lea.vmem %s260_s13, 256  ;;  %p911_p2 = scmp.lt.s32.totalorder %s260_s13, %s260_s13 }
  0x24   : > { %p904_p9 = scmp.ne.s32.totalorder %s260_s13, %s903_s23  ;;  %p912_p6 = scmp.lt.s32.totalorder %s903_s23, %s903_s23 }
  0x26   : > { %p906_p10 = pnand %p904_p9, %p892_p13  ;;  %p913_p4 = por %p912_p6, %p911_p2 }
  0x28   : > { %p907_p1 = pneg %p906_p10 }
  0x2a   : > { %p914_p8 = pnand %p913_p4, %p907_p1 }
  0x2c   : > { %917 = shalt.err (!%p914_p8)
}
  0x2d   : > { %s1097_s12 = smov 64   ;;  %s1098_s16 = smov 4  }
  0x2e   : > { %802 = dma.hbm_to_vmem [thread:$0]  (!%p1218_p11), %s1515_s3, 256, %s260_s13, [#allocation6], %s1097_s12, %s1097_s12, %s1098_s16  }
  0x2f   : > { %p42_p1 = scmp.ge.s32.totalorder %s40_s15, 2  ;;  %s49_s19 = sadd.s32 1, %s1082_s26 }
  0x30   : > { %p56_p2 = scmp.ne.s32.totalorder %s1082_s26, %s1078_s25  ;;  %p57_p4 = scmp.eq.s32.totalorder %s1094_s29, 0 }
  0x31   : > { %s1537_s15 = smov (%p42_p1, %s40_s15), 0  ;;  %p1518_p8 = scmp.eq.s32.totalorder %s1188_s30, 1 }
  0x32   : > { %1516 = sst [smem:[#allocation15_spill]] %s1537_s15  ;;  %p1245_p6 = por %p57_p4, %p56_p2 }
  0x33   : > { %p1251_p10 = por %p1518_p8, %p56_p2  ;;  %s44_s14 = ssub.s32 %s1090_s28, %s1537_s15 }
  0x34   : > { %p818_p12 = scmp.lt.s32.totalorder %s1094_s29, 2  ;;  %p47_p11 = scmp.eq.s32.totalorder %s44_s14, 0 }
  0x35   : > { %s276_s13 = sand.u32 1, %s1082_s26   ;;  %s736_s12 = sshll.u32 %s1090_s28, 7 }
  0x36   : > { %s735_s22 = sshll.u32 %s276_s13, 3  ;;  %s1266_s18 = scalar_lea.hbm %s1495_s0, %s736_s12 }
  0x37   : > { %s1260_s23 = scalar_select %p47_p11, %s1082_s26, %s49_s19  }
  0x38   : > { %s280_s8 = scalar_lea.vmem [#allocation2], %s735_s22  ;;  %p1272_p13 = pnand %p818_p12, %p1245_p6 }
  0x39   : > { %s288_s3 = sshll.u32 %s280_s8, 4  ;;  %s277_s19 = scalar_lea.sflag [#allocation3], %s276_s13  ;;  %s1268_s3 = int_to_ptr.vmem [resolvable:$true] %s288_s3 }
  0x3a   : > { %s918_s15 = scalar_lea.hbm %s1266_s18, 128  ;;  %p920_p3 = pneg %p1272_p13 }
  0x3b   : > { %p919_p0 = scmp.ne.s32.totalorder %s1266_s18, %s918_s15  ;;  %s923_s12 = scalar_lea.hbm %s1495_s0, 256 }
  0x3c   : > { %p924_p9 = scmp.lt.u32.totalorder %s1266_s18, %s1495_s0  ;;  %p925_p1 = scmp.lt.u32.totalorder %s923_s12, %s918_s15 }
  0x3d   : > { %p921_p5 = pnand %p920_p3, %p919_p0  ;;  %p927_p4 = scmp.lt.u32.totalorder %s918_s15, %s1266_s18 }
  0x3e   : > { %p926_p2 = por %p925_p1, %p924_p9 }
  0x3f   : > { %p922_p7 = pneg %p921_p5 }
  0x40   : > { %p928_p6 = por %p927_p4, %p926_p2 }
  0x42   : > { %p929_p8 = pnand %p928_p6, %p922_p7 }
  0x44   : > { %932 = shalt.err (!%p929_p8)
}
  0x45   : > { %s933_s13 = scalar_lea.vmem %s1268_s3, 128  ;;  %s1099_s17 = smov [#allocation2]  }
  0x46   : > { %p934_p12 = scmp.ne.s32.totalorder %s1268_s3, %s933_s13  ;;  %s938_s22 = sshll.u32 %s1099_s17, 4  ;;  %s939_s22 = int_to_ptr.vmem [resolvable:$false] %s938_s22 }
  0x47   : > { %s940_s8 = scalar_lea.vmem %s939_s22, 256  ;;  %p941_p5 = scmp.lt.s32.totalorder %s1268_s3, %s939_s22 }
  0x48   : > { %p936_p11 = pnand %p934_p12, %p920_p3  ;;  %p942_p9 = scmp.lt.s32.totalorder %s940_s8, %s933_s13 }
  0x4a   : > { %p937_p0 = pneg %p936_p11  ;;  %p943_p1 = por %p942_p9, %p941_p5 }
  0x4c   : > { %p944_p2 = pnand %p943_p1, %p937_p0 }
  0x4e   : > { %947 = shalt.err (!%p944_p2)
}
  0x4f   : > { %806 = dma.hbm_to_vmem [thread:$0]  (!%p1272_p13), %s1266_s18, 128, %s1268_s3, %s277_s19  }
  0x50   : > { %p1521_p7 = scmp.ne.s32.totalorder %s1513_s11, 0 }
  0x51   : > { %s1304_s15 = sand.u32 (!%p1521_p7), 1, %s1078_s25   ;;  %p1522_p3 = scmp.ne.s32.totalorder (!%p1521_p7), %s1511_s9, 0 }
  0x52   : > { %297 = sbr.rel (%p1521_p7) target bundleno = 816 (0x330), region = 40  ;;  %s738_s12 = sshll.u32 (!%p1521_p7), %s1304_s15, 3 }
  0x53   : > { %s300_s20 = scalar_lea.sflag (!%p1521_p7), [#allocation3], %s1304_s15  ;;  %s303_s16 = scalar_lea.vmem (!%p1521_p7), [#allocation2], %s738_s12 }
  0x59   : > { %1057 = dma.done.wait (%p1522_p3), %s300_s20, 128  }
  0x5a   : > { %1059 = vsyncadd (%p1522_p3), %s300_s20, 4294967168  ;;  %p1523_p4 = scmp.eq.s32.totalorder %s1188_s30, 0 }
  0x5c   : > { %1061 = dma.done.wait (%p1523_p4), [#allocation6], 256   ;;  %p1524_p13 = pmov %p1523_p4 }
  0x5d   : > { %vm352_vm0 = vcmask 261120   ;;  %v349_v0 = vld [vmem:[%s303_s16] sm:$0xff]  ;;  %v886_v7 = vld [vmem:[#allocation5] sm:$0xff]   ;;  %v1100_v8 = vmov 0.0   ;;  %vm1101_vm1 = vmmov 0   ;;  %v887_v9 = vld [vmem:[#allocation5 + $0x8] sm:$0xff]  }
  0x5e   : > { %1063 = vsyncadd (%p1524_p13), [#allocation6], 4294967040  ;;  %v353_v1 = vsel %vm352_vm0, %v349_v0, 0.0  ;;  %779 = vmatprep.subr.bf16.mxu0 %v1100_v8  ;;  %783 = vmatprep.mubr.msk.bf16.mxu0 %vm1101_vm1, %v1100_v8  ;;  %v743_v14 = vld [vmem:[%s1496_s1] ss:$0 sm:$0xff]  ;;  %s1329_s13 = sshll.u32 %s1304_s15, 4 }
  0x5f   : > { %354 = vadd.xlane.f32.xlu0 %v353_v1  ;;  %780 = vmatpush3.bf16.msra.mxu0 %v886_v7  ;;  %v744_v16 = vld [vmem:[%s1497_s2] ss:$0 sm:$0xff]  ;;  %vm451_vm2 = vcmask 60416   ;;  %s1102_s17 = smov 80   ;;  %s1103_s22 = smov 96  }
  0x60   : > { %781 = vmatprep.subr.bf16.mxu0 %v1100_v8  ;;  %v745_v20 = vld [vmem:[%s1499_s4] ss:$0 sm:$0xff]  ;;  %s1332_s8 = scalar_lea.vmem [#allocation7], %s1329_s13  ;;  %s1104_s12 = smov 88  }
  0x61   : > { %s1105_s20 = smov 104   ;;  %s1106_s16 = smov 72  }
  0x62   : > { %s1508_s3 = smov 64   ;;  %s1108_s9 = smov 56  }
  0x63   : > { %782 = vmatpush3.bf16.msra.mxu0 %v887_v9  ;;  %s1109_s11 = smov 48   ;;  %s1110_s18 = smov 120  }
  0x64   : > { %s1111_s14 = smov 112   ;;  %s1112_s19 = smov 40  }
  0xec   : > { %v355_v2 = vpop.xlane.xlu0 %354 }
  0xed   : > { %v357_v3 = vmul.f32 0.03125, %v355_v2 }
  0xef   : > { %v358_v4 = vsub.f32 %v349_v0, %v357_v3 }
  0xf1   : > { %v359_v5 = vmul.f32 %v358_v4, %v358_v4 }
  0xf3   : > { %v360_v6 = vsel %vm352_vm0, %v359_v5, 0.0 }
  0xf4   : > { %361 = vadd.xlane.f32.xlu0 %v360_v6 }
 0x181   : > { %v362_v10 = vpop.xlane.xlu0 %361 }
 0x182   : > { %v363_v11 = vmul.f32 0.03125, %v362_v10 }
 0x184   : > { %v364_v12 = vadd.f32 1e-05, %v363_v11 }
 0x186   : > { %888 = vrsqrt.f32 %v364_v12 }
 0x190   : > { %v889_v13 = vpop.eup %888 }
 0x191   : > { %v366_v15 = vmul.f32 %v889_v13, %v358_v4 }
 0x193   : > { %v373_v17 = vmul.f32 %v743_v14, %v366_v15 }
 0x195   : > { %v380_v18 = vadd.f32 %v744_v16, %v373_v17 }
 0x197   : > { %v381_v19 = vpack.c.bf16 %v380_v18, %v380_v18 }
 0x199   : > { %784 = vmatmul.mubr.msk.bf16.vlgmr.msra.gmra.mrb[0].mxu0 %vm352_vm0, %v381_v19 }
 0x26c   : > { %v442_v21 = vpop.f32.mrb[0].mxu0 }
 0x26d   : > { %v443_v22 = vadd.f32 %v745_v20, %v442_v21  ;;  %v785_v23 = vpop.f32.mrb[1].mxu0 }
 0x26e   : > { %v445_v24 = vpop.f32.mrb[2].mxu0 }
 0x26f   : > { %v448_v25 = vmul.f32 0.35355338, %v443_v22  ;;  %v771_v26 = vpack.c.bf16 %v443_v22, %v443_v22  ;;  %v786_v27 = vpop.f32.mrb[3].mxu0 }
 0x271   : > { %v449_v28 = vpack.c.bf16 %v448_v25, %v448_v25  ;;  %487 = vrot.lane.b32.xlu0 %v771_v26, %s1102_s17  ;;  %456 = vrot.lane.b32.xlu1 %v771_v26, %s1103_s22  ;;  %s340_s17 = scalar_lea.vmem [#allocation8], %s1329_s13 }
 0x272   : > { %s554_s22 = sshll.u32 %s340_s17, 4  ;;  %s1347_s22 = int_to_ptr.vmem [resolvable:$true] %s554_s22 }
 0x273   : > { %452 = vst.msk [vmem:[%s1332_s8] sm:$0xf] %vm451_vm2, %v449_v28 }
 0x275   : > { %472 = vrot.lane.b32.xlu1 %v771_v26, %s1104_s12  ;;  %497 = vrot.lane.b32.xlu0 %v449_v28, %s1105_s20  ;;  %s517_s12 = sand.u32 1, %s1188_s30   ;;  %s1342_s20 = sshll.u32 %s1086_s27, 8 }
 0x276   : > { %s1356_s27 = scalar_lea.sflag [#allocation9], %s517_s12  ;;  %s948_s30 = scalar_lea.vmem %s1347_s22, 256 }
 0x277   : > { %p949_p6 = scmp.ne.s32.totalorder %s1347_s22, %s948_s30 }
 0x279   : > { %502 = vrot.lane.b32.xlu1 %v771_v26, %s1106_s16  ;;  %p950_p8 = pnand %p949_p6, %p1251_p10 }
 0x27b   : > { %p951_p12 = pneg %p950_p8 }
 0x27d   : > { %460 = vrot.lane.b32.xlu1 %v771_v26, %s1508_s3 }
 0x281   : > { %477 = vrot.lane.b32.xlu1 %v771_v26, %s1108_s9 }
 0x285   : > { %492 = vrot.lane.b32.xlu1 %v771_v26, %s1109_s11  ;;  %s1353_s11 = scalar_lea.hbm %s1501_s6, %s1342_s20 }
 0x289   : > { %467 = vrot.lane.b32.xlu1 %v449_v28, %s1110_s18  ;;  %s1113_s18 = smov [#allocation8]  }
 0x28d   : > { %482 = vrot.lane.b32.xlu1 %v449_v28, %s1111_s14  ;;  %s952_s14 = sshll.u32 %s1113_s18, 4  ;;  %s953_s14 = int_to_ptr.vmem [resolvable:$false] %s952_s14 }
 0x28e   : > { %p955_p11 = scmp.lt.s32.totalorder %s1347_s22, %s953_s14 }
 0x291   : > { %507 = vrot.lane.b32.xlu1 %v771_v26, %s1112_s19  ;;  %s954_s19 = scalar_lea.vmem %s953_s14, 512 }
 0x292   : > { %p956_p0 = scmp.lt.s32.totalorder %s954_s19, %s948_s30 }
 0x294   : > { %p957_p5 = por %p956_p0, %p955_p11 }
 0x296   : > { %p958_p9 = pnand %p957_p5, %p951_p12 }
 0x2e3   : > { %v488_v29 = vpop.permute.xlu0 %487  ;;  %v457_v30 = vpop.permute.xlu1 %456 }
 0x2e4   : > { %755 = vst.msk [vmem:[%s340_s17 + $0x8] sm:$0xf] %vm451_vm2, %v488_v29  ;;  %459 = vst.msk [vmem:[%s340_s17] sm:$0xf] %vm451_vm2, %v457_v30 }
 0x2e7   : > { %v473_v31 = vpop.permute.xlu1 %472  ;;  %v498_v32 = vpop.permute.xlu0 %497 }
 0x2e8   : > { %752 = vst.msk [vmem:[%s340_s17 + $0x4] sm:$0xf] %vm451_vm2, %v473_v31  ;;  %757 = vst.msk [vmem:[%s1332_s8 + $0xc] sm:$0xf] %vm451_vm2, %v498_v32 }
 0x2eb   : > { %v503_v33 = vpop.permute.xlu1 %502 }
 0x2ec   : > { %758 = vst.msk [vmem:[%s340_s17 + $0xc] sm:$0xf] %vm451_vm2, %v503_v33 }
 0x2ed   : > { %961 = shalt.err (!%p958_p9)
}
 0x2ee   : > { %s962_s17 = scalar_lea.hbm %s1353_s11, 256  ;;  %s966_s9 = scalar_lea.hbm %s1501_s6, 512 }
 0x2ef   : > { %p963_p1 = scmp.ne.s32.totalorder %s1353_s11, %s962_s17  ;;  %p967_p3 = scmp.lt.u32.totalorder %s1353_s11, %s1501_s6 }
 0x2f0   : > { %p968_p4 = scmp.lt.u32.totalorder %s966_s9, %s962_s17  ;;  %p970_p6 = scmp.lt.u32.totalorder %s962_s17, %s1353_s11 }
 0x2f1   : > { %p964_p2 = pnand %p963_p1, %p1251_p10 }
 0x2f2   : > { %p969_p13 = por %p968_p4, %p967_p3 }
 0x2f3   : > { %p965_p7 = pneg %p964_p2 }
 0x2f4   : > { %p971_p8 = por %p970_p6, %p969_p13 }
 0x2f6   : > { %p972_p12 = pnand %p971_p8, %p965_p7 }
 0x2f8   : > { %975 = shalt.err (!%p972_p12)
}
 0x2f9   : > { %s1114_s30 = smov 4   ;;  %v461_v34 = vpop.permute.xlu1 %460  ;;  %s1384_s19 = scalar_lea.vmem [#allocation10], %s1329_s13 }
 0x2fa   : > { %794 = dma.vmem_to_hbm [thread:$0]  (%p1251_p10), %s1347_s22, 256, %s1353_s11, %s1356_s27, %s1508_s3, %s1508_s3, %s1114_s30  }
 0x2fb   : > { %463 = vst.msk [vmem:[%s1384_s19] sm:$0xf] %vm451_vm2, %v461_v34  ;;  %s537_s17 = sshll.u32 %s1332_s8, 4  ;;  %s1401_s11 = scalar_lea.hbm %s1500_s5, %s1342_s20  ;;  %s1395_s17 = int_to_ptr.vmem [resolvable:$true] %s537_s17 }
 0x2fc   : > { %s513_s16 = scalar_lea.sflag [#allocation4], %s1304_s15  ;;  %s976_s9 = scalar_lea.vmem %s1395_s17, 256 }
 0x2fd   : > { %v478_v35 = vpop.permute.xlu1 %477  ;;  %p977_p11 = scmp.ne.s32.totalorder %s1395_s17, %s976_s9  ;;  %s1115_s18 = smov [#allocation7]  }
 0x2fe   : > { %753 = vst.msk [vmem:[%s1384_s19 + $0x4] sm:$0xf] %vm451_vm2, %v478_v35  ;;  %s980_s14 = sshll.u32 %s1115_s18, 4  ;;  %s981_s14 = int_to_ptr.vmem [resolvable:$false] %s980_s14 }
 0x2ff   : > { %p978_p0 = pnand %p977_p11, %p1251_p10  ;;  %s982_s3 = scalar_lea.vmem %s981_s14, 512 }
 0x300   : > { %p983_p9 = scmp.lt.s32.totalorder %s1395_s17, %s981_s14  ;;  %p984_p1 = scmp.lt.s32.totalorder %s982_s3, %s976_s9 }
 0x301   : > { %v493_v36 = vpop.permute.xlu1 %492  ;;  %p979_p5 = pneg %p978_p0 }
 0x302   : > { %756 = vst.msk [vmem:[%s1384_s19 + $0x8] sm:$0xf] %vm451_vm2, %v493_v36  ;;  %p985_p2 = por %p984_p1, %p983_p9 }
 0x304   : > { %p986_p7 = pnand %p985_p2, %p979_p5 }
 0x305   : > { %v468_v37 = vpop.permute.xlu1 %467 }
 0x306   : > { %751 = vst.msk [vmem:[%s1332_s8 + $0x4] sm:$0xf] %vm451_vm2, %v468_v37 }
 0x309   : > { %v483_v38 = vpop.permute.xlu1 %482 }
 0x30a   : > { %754 = vst.msk [vmem:[%s1332_s8 + $0x8] sm:$0xf] %vm451_vm2, %v483_v38 }
 0x30b   : > { %989 = shalt.err (!%p986_p7)
}
 0x30c   : > { %s990_s8 = scalar_lea.hbm %s1401_s11, 256  ;;  %s994_s18 = scalar_lea.hbm %s1500_s5, 512 }
 0x30d   : > { %p991_p3 = scmp.ne.s32.totalorder %s1401_s11, %s990_s8  ;;  %p995_p6 = scmp.lt.u32.totalorder %s1401_s11, %s1500_s5 }
 0x30e   : > { %p996_p8 = scmp.lt.u32.totalorder %s994_s18, %s990_s8  ;;  %p998_p11 = scmp.lt.u32.totalorder %s990_s8, %s1401_s11 }
 0x30f   : > { %p992_p4 = pnand %p991_p3, %p1251_p10 }
 0x310   : > { %p997_p12 = por %p996_p8, %p995_p6 }
 0x311   : > { %p993_p13 = pneg %p992_p4 }
 0x312   : > { %p999_p0 = por %p998_p11, %p997_p12 }
 0x314   : > { %p1000_p5 = pnand %p999_p0, %p993_p13 }
 0x316   : > { %1003 = shalt.err (!%p1000_p5)
}
 0x317   : > { %s1525_s3 = smov 64   ;;  %s1526_s12 = sshll.u32 %s1384_s19, 4  ;;  %v508_v39 = vpop.permute.xlu1 %507  ;;  %s1435_s12 = int_to_ptr.vmem [resolvable:$true] %s1526_s12 }
 0x318   : > { %793 = dma.vmem_to_hbm [thread:$0]  (%p1251_p10), %s1395_s17, 256, %s1401_s11, %s513_s16, %s1525_s3, %s1525_s3, %s1114_s30  }
 0x319   : > { %s1441_s13 = scalar_lea.hbm %s1502_s7, %s1342_s20  ;;  %759 = vst.msk [vmem:[%s1384_s19 + $0xc] sm:$0xf] %vm451_vm2, %v508_v39  ;;  %s1004_s15 = scalar_lea.vmem %s1435_s12, 256 }
 0x31a   : > { %p1005_p9 = scmp.ne.s32.totalorder %s1435_s12, %s1004_s15  ;;  %s1116_s17 = smov [#allocation10]  }
 0x31b   : > { %s1008_s11 = sshll.u32 %s1116_s17, 4  ;;  %s1009_s11 = int_to_ptr.vmem [resolvable:$false] %s1008_s11 }
 0x31c   : > { %p1006_p1 = pnand %p1005_p9, %p1251_p10  ;;  %s1010_s16 = scalar_lea.vmem %s1009_s11, 512 }
 0x31d   : > { %p1011_p7 = scmp.lt.s32.totalorder %s1435_s12, %s1009_s11  ;;  %p1012_p3 = scmp.lt.s32.totalorder %s1010_s16, %s1004_s15 }
 0x31e   : > { %p1007_p2 = pneg %p1006_p1 }
 0x31f   : > { %p1013_p4 = por %p1012_p3, %p1011_p7 }
 0x321   : > { %p1014_p13 = pnand %p1013_p4, %p1007_p2 }
 0x323   : > { %1017 = shalt.err (!%p1014_p13)
}
 0x324   : > { %s1018_s20 = scalar_lea.hbm %s1441_s13, 256  ;;  %s1022_s18 = scalar_lea.hbm %s1502_s7, 512 }
 0x325   : > { %p1019_p6 = scmp.ne.s32.totalorder %s1441_s13, %s1018_s20  ;;  %p1023_p11 = scmp.lt.u32.totalorder %s1441_s13, %s1502_s7 }
 0x326   : > { %p1024_p0 = scmp.lt.u32.totalorder %s1022_s18, %s1018_s20  ;;  %p1026_p9 = scmp.lt.u32.totalorder %s1018_s20, %s1441_s13 }
 0x327   : > { %p1020_p8 = pnand %p1019_p6, %p1251_p10 }
 0x328   : > { %p1025_p5 = por %p1024_p0, %p1023_p11 }
 0x329   : > { %p1021_p12 = pneg %p1020_p8 }
 0x32a   : > { %p1027_p1 = por %p1026_p9, %p1025_p5 }
 0x32c   : > { %p1028_p2 = pnand %p1027_p1, %p1021_p12 }
 0x32e   : > { %1031 = shalt.err (!%p1028_p2)
}
 0x32f   : > { %795 = dma.vmem_to_hbm [thread:$0]  (%p1251_p10), %s1435_s12, 256, %s1441_s13, %s1356_s27, %s1525_s3, %s1525_s3, %s1114_s30  }
 0x330 PF: > { %s586_s8 = sand.u32 1, %s1074_s24   ;;  %p1527_p7 = scmp.ne.s32.totalorder %s1512_s10, 0 }
 0x331   : > { %p1528_p3 = scmp.ge.s32.totalorder %s1094_s29, 2  ;;  %s587_s15 = scalar_lea.sflag [#allocation4], %s586_s8 }
 0x333   : > { %p808_p4 = pnand %p1528_p3, %p1527_p7 }
 0x335   : > { %1065 = dma.done.wait (!%p808_p4), %s587_s15, 256  }
 0x336   : > { %1067 = vsyncadd (!%p808_p4), %s587_s15, 4294967040  ;;  %s1529_s21 = sadd.s32 4294967294, %s1094_s29  }
 0x337   : > { %s595_s17 = sand.u32 1, %s1529_s21  }
 0x338   : > { %s596_s11 = scalar_lea.sflag [#allocation9], %s595_s17 }
 0x339   : > { %1069 = dma.done.wait (!%p808_p4), %s596_s11, 512  }
 0x33a   : > { %1071 = vsyncadd (!%p808_p4), %s596_s11, 4294966784  ;;  %s28_s29 = sadd.s32 1, %s1094_s29   ;;  %s1530_s30 = sld [smem:[#allocation15_spill]] }
 0x33b   : > { %p25_p10 = scmp.ge.s32.totalorder %s28_s29, 4   ;;  %s1531_s24 = smov %s1078_s25 }
 0x33c   : > { %s1532_s25 = smov %s1082_s26  ;;  %s1533_s26 = smov %s1260_s23 }
 0x33d   : > { %s1534_s27 = smov %s1090_s28  ;;  %27 = sbr.rel (!%p25_p10) target bundleno = 11 (0xb), region = 130 }
 0x340   : > { %s1535_s28 = smov %s1530_s30 }
 0x344   :  { %610 = vsyncpa [#allocation3], 1 }
 0x345   :  { %612 = vsyncpa [#allocation3 + $0x1], 1 }
 0x346   :  { %613 = vsyncpa [#allocation6], 1 }
 0x347   :  { %614 = vsyncpa [#allocation4], 1 }
 0x348   :  { %616 = vsyncpa [#allocation4 + $0x1], 1 }
 0x349   :  { %617 = vsyncpa [#allocation9], 1 }
 0x34a   :  { %619 = vsyncpa [#allocation9 + $0x1], 1 }

</bundles_post_ra>
